<compile_context>
chip_gen: v7x
topology: tpu7x:2x2x1
jax: 0.10.0
libtpu: 0.0.40
codegen_flags: <defaults>
</compile_context>

<pallas_src>
import functools

import jax
import jax.numpy as jnp
from jax.experimental import pallas as pl
from jax.experimental.pallas import tpu as pltpu


def _focal_loss_kernel(x_ref, t_ref, out_ref, acc_ref, *,
                       gamma, size_average, n_total, tile_n):
    i = pl.program_id(0)

    @pl.when(i == 0)
    def _():
        acc_ref[...] = jnp.zeros_like(acc_ref)

    x = x_ref[...].astype(jnp.float32)            # (TN, C)
    t = t_ref[...]                                # (TN, 1) int32

    # numerically-stable log-sum-exp along classes (lanes); no full logp tile
    m = jnp.max(x, axis=-1, keepdims=True)                                  # (TN, 1)
    lse = jnp.log(jnp.sum(jnp.exp(x - m), axis=-1, keepdims=True)) + m      # (TN, 1)

    # gather(1, target): one-hot select of the raw logit, then subtract lse
    cols = jax.lax.broadcasted_iota(jnp.int32, x.shape, 1)
    x_t = jnp.sum(jnp.where(cols == t, x, 0.0), axis=-1, keepdims=True)     # (TN, 1)
    logpt = x_t - lse                                                       # <= 0

    # focal modulation, specialized on the compile-time gamma
    g = float(gamma)
    if g == 0.0:
        loss = -logpt                              # (1-pt)**0 == 1, matches torch.pow
    else:
        pt = jnp.exp(logpt)
        w = jnp.maximum(1.0 - pt, 0.0)             # exp(logpt) can round above 1
        if g == int(g) and 0 < int(g) <= 8:
            mod = w
            for _ in range(int(g) - 1):
                mod = mod * w                      # integer power: VPU-only, NaN-free
        else:
            mod = w ** g
        loss = -mod * logpt

    # mask rows past the true N (partial last tile of the cdiv grid)
    row = jax.lax.broadcasted_iota(jnp.int32, (tile_n, 1), 0) + i * tile_n
    loss = jnp.where(row < n_total, loss, 0.0)

    # cheap per-row accumulate; the expensive scalar reduce happens once at the end
    acc_ref[...] += loss

    @pl.when(i == pl.num_programs(0) - 1)
    def _():
        total = jnp.sum(acc_ref[...])
        if size_average:
            total = total * jnp.float32(1.0 / n_total)
        out_ref[...] = jnp.reshape(total, (1, 1))


def _pick_tile_n(n, c, pair_budget_bytes=12 << 20, max_rows=2048):
    """Largest row tile such that a double-buffered f32 logits tile fits the budget."""
    rows = pair_budget_bytes // (2 * c * 4)
    rows = int(max(8, min(rows, max_rows)))
    rows = (rows // 8) * 8
    if n <= rows:
        return n          # single block; block shape == full array dim is always legal
    return rows


def focal_loss(logits, target, *, gamma=0.0, size_average=True, tile_n=None):
    """Pallas TPU implementation of FocalLoss.forward.

    logits: (N, C) float (f32 or bf16), target: (N,) int. Returns scalar float32.
    """
    n, c = logits.shape
    if tile_n is None:
        tile_n = _pick_tile_n(n, c)
    t2d = target.reshape(n, 1).astype(jnp.int32)

    kernel = functools.partial(
        _focal_loss_kernel,
        gamma=float(gamma),
        size_average=bool(size_average),
        n_total=n,
        tile_n=tile_n,
    )

    out = pl.pallas_call(
        kernel,
        out_shape=jax.ShapeDtypeStruct((1, 1), jnp.float32),
        grid_spec=pltpu.PrefetchScalarGridSpec(
            num_scalar_prefetch=0,
            grid=(pl.cdiv(n, tile_n),),
            in_specs=[
                pl.BlockSpec((tile_n, c), lambda i: (i, 0)),
                pl.BlockSpec((tile_n, 1), lambda i: (i, 0)),
            ],
            out_specs=pl.BlockSpec((1, 1), lambda i: (0, 0)),
            scratch_shapes=[pltpu.VMEM((tile_n, 1), jnp.float32)],
        ),
        compiler_params=pltpu.CompilerParams(
            # Resident accumulator across the row-tile axis -> "arbitrary".
            # TODO(synk): on v7x, shard the row axis across the 2 TensorCores by
            # emitting lane-dense per-tile partials and reducing outside the kernel.
            dimension_semantics=("arbitrary",),
            # Raised scoped-VMEM limit: safe on v5e/v6e (128 MiB phys) and within
            # v7x's 64 MiB; double-buffered logits pair is capped at ~12 MiB above.
            vmem_limit_bytes=32 << 20,
        ),
    )(logits, t2d)
    return out[0, 0]


def focal_loss_ref(logits, target, *, gamma=0.0, size_average=True):
    logp = jax.nn.log_softmax(logits.astype(jnp.float32), axis=-1)
    logpt = jnp.take_along_axis(
        logp, target.reshape(-1, 1).astype(jnp.int32), axis=1).reshape(-1)
    pt = jnp.exp(logpt)
    loss = -1.0 * (1.0 - pt) ** gamma * logpt
    return loss.mean() if size_average else loss.sum()


if __name__ == "__main__":
    # FocalLoss has no learnable parameters (gamma / size_average are config).
    key = jax.random.PRNGKey(0)
    k1, k2, k3, k4 = jax.random.split(key, 4)

    # primary check: gamma=2 (integer fast path), mean reduction
    N, C = 16, 32
    logits = jax.random.normal(k1, (N, C), dtype=jnp.float32)
    target = jax.random.randint(k2, (N,), 0, C, dtype=jnp.int32)

    out = jax.block_until_ready(focal_loss(logits, target, gamma=2.0, size_average=True))
    ref = focal_loss_ref(logits, target, gamma=2.0, size_average=True)
    assert jnp.allclose(out, ref, atol=1e-5, rtol=1e-5), (out, ref)

    # module defaults: gamma=0, sum reduction
    out0 = jax.block_until_ready(focal_loss(logits, target, gamma=0.0, size_average=False))
    ref0 = focal_loss_ref(logits, target, gamma=0.0, size_average=False)
    assert jnp.allclose(out0, ref0, atol=1e-5, rtol=1e-5), (out0, ref0)

    # non-divisible N with a forced small tile: exercises cdiv grid + row masking,
    # plus the non-integer-gamma (clamped pow) path.
    N2 = 20
    logits2 = jax.random.normal(k3, (N2, C), dtype=jnp.float32)
    target2 = jax.random.randint(k4, (N2,), 0, C, dtype=jnp.int32)
    out2 = jax.block_until_ready(
        focal_loss(logits2, target2, gamma=2.5, size_average=True, tile_n=8))
    ref2 = focal_loss_ref(logits2, target2, gamma=2.5, size_average=True)
    assert jnp.allclose(out2, ref2, atol=1e-5, rtol=1e-5), (out2, ref2)

    # bf16 logits accepted directly (halves HBM traffic; compute stays f32 in-kernel)
    out_bf = jax.block_until_ready(
        focal_loss(logits.astype(jnp.bfloat16), target, gamma=2.0, size_average=True))
    ref_bf = focal_loss_ref(logits.astype(jnp.bfloat16), target, gamma=2.0,
                            size_average=True)
    assert jnp.allclose(out_bf, ref_bf, atol=1e-5, rtol=1e-5), (out_bf, ref_bf)

    print("KERNEL_OK")
</pallas_src>

<mosaic_0001>
module attributes {stable_mosaic.version = 11 : i64} {
  func.func @_focal_loss_kernel(%arg0: i32, %arg1: memref<16x32xf32, #tpu.memory_space<vmem>>, %arg2: memref<16x1xi32, #tpu.memory_space<vmem>>, %arg3: memref<1x1xf32, #tpu.memory_space<vmem>>, %arg4: memref<16x1xf32, #tpu.memory_space<vmem>>) attributes {dimension_semantics = [#tpu.dimension_semantics<arbitrary>], iteration_bounds = array<i64: 1>, scalar_prefetch = 0 : i64, scratch_operands = 1 : i64, tpu.core_type = #tpu.core_type<tc>, window_params = [{transform_indices = @transform_0, window_bounds = array<i64: 16, 32>}, {transform_indices = @transform_1, window_bounds = array<i64: 16, 1>}, {pipeline_mode = #tpu.pipeline_mode<synchronous>, transform_indices = @transform_2, window_bounds = array<i64: 1, 1>}]} {
    %c0_i32 = arith.constant 0 : i32
    %0 = arith.cmpi eq, %arg0, %c0_i32 : i32
    %1 = arith.extui %0 : i1 to i32
    %c0_i32_0 = arith.constant 0 : i32
    %2 = arith.cmpi ne, %1, %c0_i32_0 : i32
    scf.if %2 {
      %cst_18 = arith.constant 0.000000e+00 : f32
      %45 = vector.broadcast %cst_18 : f32 to vector<16x1xf32>
      %c0_19 = arith.constant 0 : index
      %c0_20 = arith.constant 0 : index
      %46 = vector.load %arg4[%c0_19, %c0_20] : memref<16x1xf32, #tpu.memory_space<vmem>>, vector<16x1xf32>
      tpu.vector_store %arg4[%c0_19, %c0_20], %45 {strides = array<i32>} : memref<16x1xf32, #tpu.memory_space<vmem>>, vector<16x1xf32>,
    } else {
    }
    %c0 = arith.constant 0 : index
    %c0_1 = arith.constant 0 : index
    %3 = vector.load %arg1[%c0, %c0_1] : memref<16x32xf32, #tpu.memory_space<vmem>>, vector<16x32xf32>
    %c0_2 = arith.constant 0 : index
    %c0_3 = arith.constant 0 : index
    %4 = vector.load %arg2[%c0_2, %c0_3] : memref<16x1xi32, #tpu.memory_space<vmem>>, vector<16x1xi32>
    %cst = arith.constant dense<0xFF800000> : vector<16xf32>
    %5 = vector.multi_reduction <maximumf>, %3, %cst [1] : vector<16x32xf32> to vector<16xf32>
    %6 = vector.shape_cast %5 : vector<16xf32> to vector<16x1xf32>
    %7 = vector.broadcast %6 : vector<16x1xf32> to vector<16x32xf32>
    %8 = arith.subf %3, %7 : vector<16x32xf32>
    %9 = math.exp %8 : vector<16x32xf32>
    %cst_4 = arith.constant dense<0.000000e+00> : vector<16xf32>
    %10 = vector.multi_reduction <add>, %9, %cst_4 [1] : vector<16x32xf32> to vector<16xf32>
    %11 = vector.shape_cast %10 : vector<16xf32> to vector<16x1xf32>
    %12 = math.log %11 : vector<16x1xf32>
    %13 = arith.addf %12, %6 : vector<16x1xf32>
    %14 = tpu.iota {dimensions = array<i32: 1>} : vector<16x32xi32>
    %15 = vector.broadcast %4 : vector<16x1xi32> to vector<16x32xi32>
    %16 = arith.cmpi eq, %14, %15 : vector<16x32xi32>
    %cst_5 = arith.constant 0.000000e+00 : f32
    %17 = vector.broadcast %cst_5 : f32 to vector<16x32xf32>
    %18 = arith.select %16, %3, %17 : vector<16x32xi1>, vector<16x32xf32>
    %cst_6 = arith.constant dense<0.000000e+00> : vector<16xf32>
    %19 = vector.multi_reduction <add>, %18, %cst_6 [1] : vector<16x32xf32> to vector<16xf32>
    %20 = vector.shape_cast %19 : vector<16xf32> to vector<16x1xf32>
    %21 = arith.subf %20, %13 : vector<16x1xf32>
    %22 = math.exp %21 : vector<16x1xf32>
    %cst_7 = arith.constant 1.000000e+00 : f32
    %23 = vector.broadcast %cst_7 : f32 to vector<16x1xf32>
    %24 = arith.subf %23, %22 : vector<16x1xf32>
    %cst_8 = arith.constant 0.000000e+00 : f32
    %25 = vector.broadcast %cst_8 : f32 to vector<16x1xf32>
    %26 = arith.maximumf %24, %25 : vector<16x1xf32>
    %27 = arith.mulf %26, %26 : vector<16x1xf32>
    %cst_9 = arith.constant 0.000000e+00 : f32
    %28 = vector.broadcast %cst_9 : f32 to vector<16x1xf32>
    %29 = arith.subf %28, %27 : vector<16x1xf32>
    %30 = arith.mulf %29, %21 : vector<16x1xf32>
    %31 = tpu.iota {dimensions = array<i32: 0>} : vector<16x1xi32>
    %c16_i32 = arith.constant 16 : i32
    %32 = arith.muli %arg0, %c16_i32 : i32
    %33 = vector.broadcast %32 : i32 to vector<16x1xi32>
    %34 = arith.addi %31, %33 : vector<16x1xi32>
    %c16_i32_10 = arith.constant 16 : i32
    %35 = vector.broadcast %c16_i32_10 : i32 to vector<16x1xi32>
    %36 = arith.cmpi slt, %34, %35 : vector<16x1xi32>
    %cst_11 = arith.constant 0.000000e+00 : f32
    %37 = vector.broadcast %cst_11 : f32 to vector<16x1xf32>
    %38 = arith.select %36, %30, %37 : vector<16x1xi1>, vector<16x1xf32>
    %c0_12 = arith.constant 0 : index
    %c0_13 = arith.constant 0 : index
    %39 = vector.load %arg4[%c0_12, %c0_13] : memref<16x1xf32, #tpu.memory_space<vmem>>, vector<16x1xf32>
    %40 = arith.addf %39, %38 : vector<16x1xf32>
    %c0_14 = arith.constant 0 : index
    %c0_15 = arith.constant 0 : index
    %41 = vector.load %arg4[%c0_14, %c0_15] : memref<16x1xf32, #tpu.memory_space<vmem>>, vector<16x1xf32>
    tpu.vector_store %arg4[%c0_14, %c0_15], %40 {strides = array<i32>} : memref<16x1xf32, #tpu.memory_space<vmem>>, vector<16x1xf32>,
    %c0_i32_16 = arith.constant 0 : i32
    %42 = arith.cmpi eq, %arg0, %c0_i32_16 : i32
    %43 = arith.extui %42 : i1 to i32
    %c0_i32_17 = arith.constant 0 : i32
    %44 = arith.cmpi ne, %43, %c0_i32_17 : i32
    scf.if %44 {
      %c0_18 = arith.constant 0 : index
      %c0_19 = arith.constant 0 : index
      %45 = vector.load %arg4[%c0_18, %c0_19] : memref<16x1xf32, #tpu.memory_space<vmem>>, vector<16x1xf32>
      %46 = vector.shape_cast %45 : vector<16x1xf32> to vector<1x16x1xf32>
      %cst_20 = arith.constant dense<0.000000e+00> : vector<1xf32>
      %47 = vector.multi_reduction <add>, %46, %cst_20 [1, 2] : vector<1x16x1xf32> to vector<1xf32>
      %48 = vector.shape_cast %47 : vector<1xf32> to vector<1x1x1xf32>
      %49 = vector.extract %48[0, 0, 0] : f32 from vector<1x1x1xf32>
      %cst_21 = arith.constant 6.250000e-02 : f32
      %50 = arith.mulf %49, %cst_21 : f32
      %51 = vector.broadcast %50 : f32 to vector<1x1xf32>
      %c0_22 = arith.constant 0 : index
      %c0_23 = arith.constant 0 : index
      %52 = vector.load %arg3[%c0_22, %c0_23] : memref<1x1xf32, #tpu.memory_space<vmem>>, vector<1x1xf32>
      tpu.vector_store %arg3[%c0_22, %c0_23], %51 {strides = array<i32>} : memref<1x1xf32, #tpu.memory_space<vmem>>, vector<1x1xf32>,
    } else {
    }
    return
  }
  func.func @transform_0(%arg0: i32) -> (i32, i32) {
    %c0_i32 = arith.constant 0 : i32
    %c0_i32_0 = arith.constant 0 : i32
    return %arg0, %c0_i32 : i32, i32
  }
  func.func @transform_1(%arg0: i32) -> (i32, i32) {
    %c0_i32 = arith.constant 0 : i32
    %c0_i32_0 = arith.constant 0 : i32
    return %arg0, %c0_i32 : i32, i32
  }
  func.func @transform_2(%arg0: i32) -> (i32, i32) {
    %c0_i32 = arith.constant 0 : i32
    %c0_i32_0 = arith.constant 0 : i32
    %c0_i32_1 = arith.constant 0 : i32
    return %c0_i32, %c0_i32_0 : i32, i32
  }
}

</mosaic_0001>

<bundles_post_ra>
// kernel: tpu_custom_call.1
= control target key start
LH: loop header
LB: loop body
LE: loop exit
PB: predicated region body
PF: predicated region fallthrough
CT: control target
= control target key end

     0   :  { %vm23_vm0 = vcmask 261120   ;;  %v178_v4 = vmov 0   ;;  %s232_s0 = inlined_call_operand.vmem [shape: f32[16,32], index: 0, kind: input, shape index: {}]   ;;  %s233_s1 = inlined_call_operand.vmem [shape: s32[16,1], index: 1, kind: input, shape index: {}]   ;;  %s234_s2 = inlined_call_operand.hbm [shape: f32[1,1], index: 2, kind: output, shape index: {}]  }
   0x1   :  { %v19_v0 = vld [vmem:[%s232_s0] sm:$0xff]  ;;  %v20_v1 = vld [vmem:[%s232_s0 + $0x8] sm:$0xff]  ;;  %140 = vset.pattern.permute.xlu1 %v178_v4  ;;  %141 = vset.pattern.permute.xlu0 %v178_v4 }
   0x2   :  { %v21_v2 = vld [vmem:[%s233_s1] sm:$0xff]  ;;  %v24_v3 = vsel %vm23_vm0, %v19_v0, -inf }
   0x3   :  { %7 = vsyncpa [#allocation4], 0  ;;  %25 = vmax.xlane.f32.xlu0 %v24_v3  ;;  %51 = vperm.xlu1 %140, %v21_v2   ;;  %v27_v5 = vsel %vm23_vm0, %v20_v1, -inf  ;;  %v22_v6 = vld [vmem:[%s233_s1 + $0x8] sm:$0xff]  ;;  %v48_v11 = vlaneseq  ;;  %vm16_vm3 = vcmask 7168   ;;  %v179_v25 = vmov 0.0  }
   0x4   :  { %17 = vst.msk [vmem:[#allocation2] sm:$0xff] %vm16_vm3, %v179_v25  ;;  %18 = vst.msk [vmem:[#allocation2 + $0x8] sm:$0xff] %vm16_vm3, %v179_v25  ;;  %s180_s0 = smov [#allocation3]   ;;  %vm119_vm4 = vcmask 0  }
   0x5   :  { %v49_v15 = vand.u32 127, %v48_v11  ;;  %s127_s1 = sshll.u32 %s180_s0, 4  ;;  %s128_s1 = int_to_ptr.vmem [resolvable:$true] %s127_s1 }
   0x6   :  { %s154_s19 = scalar_lea.vmem %s128_s1, 16  ;;  %s158_s20 = scalar_lea.vmem %s128_s1, 32 }
   0x7   :  { %28 = vmax.xlane.f32.xlu0 %v27_v5  ;;  %54 = vperm.xlu1 %140, %v22_v6   ;;  %p155_p0 = scmp.ne.s32.totalorder %s128_s1, %s154_s19  ;;  %p159_p1 = scmp.lt.s32.totalorder %s128_s1, %s128_s1 }
   0x8   :  { %p160_p2 = scmp.lt.s32.totalorder %s158_s20, %s154_s19 }
   0xa   :  { %p161_p3 = por %p160_p2, %p159_p1 }
   0xb   :  { %v93_v48 = vld [vmem:[#allocation2] sm:$0xff]  ;;  %v94_v53 = vld [vmem:[#allocation2 + $0x8] sm:$0xff] }
   0xc   :  { %p162_p4 = pnand %p161_p3, %p155_p0 }
  0x82   :  { %v52_v14 = vpop.permute.xlu1 %51 }
  0x83   :  { %vm56_vm1 = vcmp.eq.s32.totalorder %v49_v15, %v52_v14 }
  0x84   :  { %v58_v18 = vsel %vm56_vm1, %v19_v0, 0.0 }
  0x85   :  { %v60_v20 = vsel %vm23_vm0, %v58_v18, 0.0 }
  0x86   :  { %v55_v16 = vpop.permute.xlu1 %54 }
  0x87   :  { %vm57_vm2 = vcmp.eq.s32.totalorder %v49_v15, %v55_v16 }
  0x88   :  { %v59_v22 = vsel %vm57_vm2, %v20_v1, 0.0 }
  0x89   :  { %v63_v24 = vsel %vm23_vm0, %v59_v22, 0.0 }
  0x90   :  { %v26_v7 = vpop.xlane.xlu0 %25 }
  0x91   :  { %v30_v8 = vsub.f32 %v19_v0, %v26_v7 }
  0x93   :  { %v32_v9 = vmul.f32 1.442695, %v30_v8 }
  0x94   :  { %v29_v10 = vpop.xlane.xlu0 %28 }
  0x95   :  { %142 = vpow2.f32 %v32_v9  ;;  %v31_v12 = vsub.f32 %v20_v1, %v29_v10 }
  0x97   :  { %v34_v13 = vmul.f32 1.442695, %v31_v12 }
  0x99   :  { %144 = vpow2.f32 %v34_v13 }
  0x9f   :  { %v143_v17 = vpop.eup %142 }
  0xa0   :  { %v36_v19 = vsel %vm23_vm0, %v143_v17, 0.0 }
  0xa1   :  { %37 = vadd.xlane.f32.xlu0 %v36_v19 }
  0xa3   :  { %v145_v21 = vpop.eup %144 }
  0xa4   :  { %v39_v23 = vsel %vm23_vm0, %v145_v21, 0.0 }
  0xa5   :  { %40 = vadd.xlane.f32.xlu1 %v39_v23  ;;  %61 = vadd.xlane.f32.xlu0 %v60_v20 }
  0xa9   :  { %64 = vadd.xlane.f32.xlu0 %v63_v24 }
 0x12e   :  { %v38_v26 = vpop.xlane.xlu0 %37 }
 0x12f   :  { %146 = vlog2.f32 %v38_v26 }
 0x132   :  { %v41_v27 = vpop.xlane.xlu1 %40  ;;  %v62_v30 = vpop.xlane.xlu0 %61 }
 0x133   :  { %148 = vlog2.f32 %v41_v27 }
 0x136   :  { %v65_v37 = vpop.xlane.xlu0 %64 }
 0x139   :  { %v147_v28 = vpop.eup %146 }
 0x13a   :  { %v43_v29 = vmul.f32 0.6931472, %v147_v28 }
 0x13c   :  { %v46_v31 = vadd.f32 %v43_v29, %v26_v7 }
 0x13d   :  { %v149_v32 = vpop.eup %148 }
 0x13e   :  { %v45_v33 = vmul.f32 0.6931472, %v149_v32  ;;  %v66_v34 = vsub.f32 %v62_v30, %v46_v31 }
 0x140   :  { %v68_v35 = vmul.f32 1.442695, %v66_v34  ;;  %v47_v36 = vadd.f32 %v45_v33, %v29_v10 }
 0x142   :  { %150 = vpow2.f32 %v68_v35  ;;  %v67_v38 = vsub.f32 %v65_v37, %v47_v36 }
 0x144   :  { %v70_v39 = vmul.f32 1.442695, %v67_v38 }
 0x146   :  { %152 = vpow2.f32 %v70_v39 }
 0x14c   :  { %v151_v40 = vpop.eup %150 }
 0x14d   :  { %v72_v41 = vsub.f32 1.0, %v151_v40 }
 0x14f   :  { %v74_v42 = vmax.f32 %v72_v41, 0.0 }
 0x150   :  { %v153_v43 = vpop.eup %152 }
 0x151   :  { %v76_v44 = vmul.f32 %v74_v42, %v74_v42  ;;  %v73_v45 = vsub.f32 1.0, %v153_v43 }
 0x153   :  { %v78_v46 = vsub.f32 0.0, %v76_v44  ;;  %v75_v47 = vmax.f32 %v73_v45, 0.0 }
 0x155   :  { %v80_v49 = vmul.f32 %v78_v46, %v66_v34  ;;  %v77_v50 = vmul.f32 %v75_v47, %v75_v47 }
 0x157   :  { %v95_v51 = vadd.f32 %v93_v48, %v80_v49  ;;  %v79_v52 = vsub.f32 0.0, %v77_v50 }
 0x159   :  { %98 = vst.msk [vmem:[#allocation2] sm:$0xff] %vm16_vm3, %v95_v51  ;;  %v81_v54 = vmul.f32 %v79_v52, %v67_v38 }
 0x15b   :  { %v96_v55 = vadd.f32 %v94_v53, %v81_v54 }
 0x15d   :  { %99 = vst.msk [vmem:[#allocation2 + $0x8] sm:$0xff] %vm16_vm3, %v96_v55 }
 0x160   :  { %v103_v56 = vld [vmem:[#allocation2] sm:$0xff] }
 0x161   :  { %v105_v58 = vsel %vm16_vm3, %v103_v56, 0.0 }
 0x164   :  { %v104_v57 = vld [vmem:[#allocation2 + $0x8] sm:$0xff] }
 0x165   :  { %v106_v59 = vsel %vm16_vm3, %v104_v57, 0.0 }
 0x166   :  { %v107_v60 = vadd.f32 %v106_v59, %v105_v58 }
 0x168   :  { %108 = vadd.xlane.f32.xlu0 %v107_v60 }
 0x1f5   :  { %v109_v61 = vpop.xlane.xlu0 %108 }
 0x1f6   :  { %v110_v62 = vrot.slane %v109_v61, 4 }
 0x1f8   :  { %v111_v63 = vadd.f32 %v110_v62, %v109_v61 }
 0x1fa   :  { %v112_v0 = vrot.slane %v111_v63, 2 }
 0x1fc   :  { %v113_v1 = vadd.f32 %v112_v0, %v111_v63 }
 0x1fe   :  { %v114_v2 = vrot.slane %v113_v1, 1 }
 0x200   :  { %v115_v3 = vadd.f32 %v114_v2, %v113_v1 }
 0x202   :  { %135 = vpush %v115_v3 }
 0x233   :  { %s136_s17 = spop %135 }
 0x234   :  { %s117_s18 = smul.f32 0.0625, %s136_s17 }
 0x236   :  { %v118_v4 = vstv %s117_s18 }
 0x237   :  { %120 = vst.msk [vmem:[#allocation3] sm:$0x1] %vm119_vm4, %v118_v4 }
 0x238   :  { %165 = shalt.err (!%p162_p4)
}
 0x239   :  { %s166_s23 = scalar_lea.hbm %s234_s2, 16 }
 0x23a   :  { %p167_p5 = scmp.ne.s32.totalorder %s234_s2, %s166_s23  ;;  %p170_p6 = scmp.lt.u32.totalorder %s166_s23, %s234_s2 }
 0x23c   :  { %p172_p7 = pnand %p170_p6, %p167_p5 }
 0x23e   :  { %175 = shalt.err (!%p172_p7)
}
 0x23f   :  { %130 = dma.vmem_to_hbm [thread:$0]  %s128_s1, 16, %s234_s2, [#allocation4]  }
 0x240   :  { %176 = dma.done.wait [#allocation4], 16  }
 0x241   :  { %177 = vsyncadd [#allocation4], 4294967280 }
 0x242   :  { %134 = vsyncpa [#allocation4], 1 }

</bundles_post_ra>
